<compile_context>
chip_gen: v7x
topology: tpu7x:2x2x1
jax: 0.10.0
libtpu: 0.0.40
codegen_flags: <defaults>
</compile_context>

<pallas_src>
import functools

import jax
import jax.numpy as jnp
from jax.experimental import pallas as pl
from jax.experimental.pallas import tpu as pltpu


# --------------------------------------------------------------------------
# Parameter setup (deterministic, mirrors the PyTorch __init__)
# --------------------------------------------------------------------------
def make_positional_table(max_len: int, hidden_dim: int) -> jnp.ndarray:
    """Returns pe of shape (max_len, 1, hidden_dim), float32."""
    position = jnp.arange(max_len, dtype=jnp.float32)[:, None]            # (L, 1)
    div_term = jnp.exp(
        jnp.arange(0, hidden_dim, 2, dtype=jnp.float32)
        * (-jnp.log(jnp.float32(10000.0)) / hidden_dim)
    )                                                                      # (H/2,)
    pe = jnp.zeros((max_len, hidden_dim), dtype=jnp.float32)
    pe = pe.at[:, 0::2].set(jnp.sin(position * div_term))
    pe = pe.at[:, 1::2].set(jnp.cos(position * div_term))
    return pe[:, None, :]                                                  # (L, 1, H)


# --------------------------------------------------------------------------
# Pallas kernel: per lane strip b:  out[:, b*H:(b+1)*H] = drop(x_strip + pe)
# --------------------------------------------------------------------------
def _pe_kernel(seed_ref, x_ref, pe_ref, o_ref, *, batch_per_block: int,
               hidden: int, dropout_p: float, training: bool):
    # x_ref / o_ref: (ts, gb*H)   pe_ref: (ts, H)   seed_ref: SMEM (1,)
    pe = pe_ref[...]                                   # already x.dtype
    use_dropout = training and dropout_p > 0.0

    if use_dropout:
        # prng_seed folds all arguments, so distinct (seed, i, j) tuples give
        # distinct streams regardless of grid size (no additive collisions).
        pltpu.prng_seed(seed_ref[0], pl.program_id(0), pl.program_id(1))
        threshold = jnp.uint32(min(int(round(dropout_p * 4294967296.0)),
                                   4294967295))
        scale = 1.0 / (1.0 - dropout_p)                # inverted dropout

    # Static unroll over the batch groups packed along the lane axis; the pe
    # strip is re-used directly (no (ts, gb*H) broadcast temporary).
    for b in range(batch_per_block):
        sl = pl.ds(b * hidden, hidden)                 # static lane strip
        y = x_ref[:, sl] + pe                          # VPU add, storage dtype
        if use_dropout:
            bits = pltpu.bitcast(pltpu.prng_random_bits(y.shape), jnp.uint32)
            keep = bits >= threshold                   # P(keep) = 1 - p
            # TODO(synk): for bf16 x, derive two 16-bit keep decisions per
            # uint32 PRNG word to halve prng_random_bits volume on v7x.
            y = jnp.where(keep, y * scale, 0)
        o_ref[:, sl] = y.astype(o_ref.dtype)


# --------------------------------------------------------------------------
# Tile selection: (seq rows, batch groups) per block, x-block ~<= target bytes
# --------------------------------------------------------------------------
def _choose_tiles(seq_len: int, batch: int, hidden: int, itemsize: int,
                  target_bytes: int) -> tuple[int, int]:
    # Lane-axis tiling (batch groups): only when a full-width 8-row slab would
    # already blow the target (very large B*H).
    gb = batch
    if 8 * batch * hidden * itemsize > target_bytes:
        cand = max(1, target_bytes // (8 * hidden * itemsize))
        cand = min(cand, batch)
        if cand < batch and (cand * hidden) % 128 == 0:
            gb = cand
        # TODO(synk): if H is not a multiple of 128 we keep the full lane
        # width (larger blocks) rather than emit masked lane-strip stores.

    row_bytes = gb * hidden * itemsize
    rows = max(1, target_bytes // max(row_bytes, 1))
    if rows >= seq_len or seq_len <= 8:
        ts = seq_len                       # single full-extent seq block
    else:
        ts = max(8, (rows // 8) * 8)       # multiple of 8; tail block masked
    return ts, gb


# --------------------------------------------------------------------------
# Wrapper: out = dropout(x + pe[:S]) with x (S, B, H)
# --------------------------------------------------------------------------
def positional_encoding_forward(
    x: jnp.ndarray,
    pe: jnp.ndarray,
    *,
    dropout_p: float = 0.1,
    training: bool = False,
    seed=0,
    target_block_bytes: int = 6 << 20,
    donate_x: bool = False,
) -> jnp.ndarray:
    """x: (S, B, H); pe: (max_len, 1, H) float32. Returns (S, B, H), x.dtype."""
    S, B, H = x.shape

    # Lane-dense 2-D views (free reshapes of contiguous arrays).
    x2d = x.reshape(S, B * H)                       # (S, B*H)
    pe2d = pe[:S, 0, :].astype(x.dtype)             # (S, H), x.dtype
    # NOTE: for bf16 x, PyTorch type promotion (bf16 x + f32 pe buffer) would
    # yield an f32 output; here we add and store in x.dtype for bandwidth.

    itemsize = x.dtype.itemsize
    ts, gb = _choose_tiles(S, B, H, itemsize, target_block_bytes)
    n_i = pl.cdiv(S, ts)                            # seq blocks (tail masked)
    n_j = pl.cdiv(B, gb)                            # lane (batch-group) blocks

    # Seed may be a Python int or a traced/device int32 scalar (no recompiles).
    seed_arr = jnp.reshape(jnp.asarray(seed, dtype=jnp.int32), (1,))

    kernel = functools.partial(_pe_kernel, batch_per_block=gb, hidden=H,
                               dropout_p=float(dropout_p),
                               training=bool(training))

    # CORE_PARALLEL shards the seq axis across v7x's 2 TensorCores (each has
    # its own DMA path to HBM); harmless single-core no-op on v5e/v6e.
    seq_sem = getattr(pltpu, "CORE_PARALLEL", pltpu.PARALLEL)

    io_bytes = 2 * S * B * H * itemsize + S * H * pe2d.dtype.itemsize
    cost = pl.CostEstimate(flops=S * B * H, transcendentals=0,
                           bytes_accessed=io_bytes)

    out2d = pl.pallas_call(
        kernel,
        out_shape=jax.ShapeDtypeStruct((S, B * H), x.dtype),
        grid_spec=pltpu.PrefetchScalarGridSpec(
            num_scalar_prefetch=1,                  # dropout seed in SMEM
            grid=(n_i, n_j),
            in_specs=[
                pl.BlockSpec((ts, gb * H), lambda i, j, sref: (i, j)),
                pl.BlockSpec((ts, H), lambda i, j, sref: (i, 0)),
            ],
            out_specs=pl.BlockSpec((ts, gb * H), lambda i, j, sref: (i, j)),
        ),
        compiler_params=pltpu.CompilerParams(
            dimension_semantics=(seq_sem, pltpu.ARBITRARY),
            # Double-buffered x + out (~6 MiB blocks) + pe + strip temps stay
            # well under 48 MiB; explicit limit so v5e's 16 MiB scoped default
            # never caps the tile, while staying inside v7x's 64 MiB physical.
            vmem_limit_bytes=48 << 20,
        ),
        cost_estimate=cost,
        # Aliasing only saves the output HBM allocation (not DMA bytes); only
        # enable when the caller can donate x.
        input_output_aliases=({1: 0} if donate_x else {}),
    )(seed_arr, x2d, pe2d)

    return out2d.reshape(S, B, H)


# --------------------------------------------------------------------------
# Demo / self-check (eval mode; dropout is identity, matching module.eval()).
# Training-mode dropout uses the TPU hardware PRNG (pltpu.prng_seed /
# prng_random_bits), which has no CPU/interpret lowering, so it is not
# exercised in this self-check.
# --------------------------------------------------------------------------
if __name__ == "__main__":
    seq_len, batch, hidden = 16, 2, 128
    max_len = 64

    key = jax.random.PRNGKey(0)
    x = jax.random.normal(key, (seq_len, batch, hidden), dtype=jnp.float32)
    pe = make_positional_table(max_len, hidden)

    out = positional_encoding_forward(x, pe, dropout_p=0.1, training=False)
    out = jax.block_until_ready(out)

    ref = x + pe[:seq_len]
    assert out.shape == (seq_len, batch, hidden)
    assert out.dtype == x.dtype
    assert jnp.allclose(out, ref, atol=1e-6, rtol=1e-6)

    print("KERNEL_OK")
</pallas_src>

<mosaic_0001>
module attributes {stable_mosaic.version = 11 : i64} {
  func.func @_pe_kernel(%arg0: i32, %arg1: i32, %arg2: memref<1xi32, #tpu.memory_space<smem>>, %arg3: memref<16x256xf32, #tpu.memory_space<vmem>>, %arg4: memref<16x128xf32, #tpu.memory_space<vmem>>, %arg5: memref<16x256xf32, #tpu.memory_space<vmem>>) attributes {dimension_semantics = [#tpu.dimension_semantics<core_parallel>, #tpu.dimension_semantics<arbitrary>], iteration_bounds = array<i64: 1, 1>, scalar_prefetch = 1 : i64, scratch_operands = 0 : i64, tpu.core_type = #tpu.core_type<tc>, window_params = [{transform_indices = @transform_0, window_bounds = array<i64: 16, 256>}, {transform_indices = @transform_1, window_bounds = array<i64: 16, 128>}, {transform_indices = @transform_2, window_bounds = array<i64: 16, 256>}]} {
    %c0 = arith.constant 0 : index
    %c0_0 = arith.constant 0 : index
    %0 = vector.load %arg4[%c0, %c0_0] : memref<16x128xf32, #tpu.memory_space<vmem>>, vector<16x128xf32>
    %c0_1 = arith.constant 0 : index
    %c0_2 = arith.constant 0 : index
    %1 = vector.load %arg3[%c0_1, %c0_2] : memref<16x256xf32, #tpu.memory_space<vmem>>, vector<16x128xf32>
    %2 = arith.addf %1, %0 : vector<16x128xf32>
    %c0_3 = arith.constant 0 : index
    %c0_4 = arith.constant 0 : index
    %3 = vector.load %arg5[%c0_3, %c0_4] : memref<16x256xf32, #tpu.memory_space<vmem>>, vector<16x128xf32>
    tpu.vector_store %arg5[%c0_3, %c0_4], %2 {strides = array<i32>} : memref<16x256xf32, #tpu.memory_space<vmem>>, vector<16x128xf32>,
    %c0_5 = arith.constant 0 : index
    %c128 = arith.constant 128 : index
    %4 = vector.load %arg3[%c0_5, %c128] : memref<16x256xf32, #tpu.memory_space<vmem>>, vector<16x128xf32>
    %5 = arith.addf %4, %0 : vector<16x128xf32>
    %c0_6 = arith.constant 0 : index
    %c128_7 = arith.constant 128 : index
    %6 = vector.load %arg5[%c0_6, %c128_7] : memref<16x256xf32, #tpu.memory_space<vmem>>, vector<16x128xf32>
    tpu.vector_store %arg5[%c0_6, %c128_7], %5 {strides = array<i32>} : memref<16x256xf32, #tpu.memory_space<vmem>>, vector<16x128xf32>,
    return
  }
  func.func @transform_0(%arg0: i32, %arg1: i32, %arg2: memref<1xi32, #tpu.memory_space<smem>>) -> (i32, i32) {
    %c0_i32 = arith.constant 0 : i32
    return %arg0, %arg1 : i32, i32
  }
  func.func @transform_1(%arg0: i32, %arg1: i32, %arg2: memref<1xi32, #tpu.memory_space<smem>>) -> (i32, i32) {
    %c0_i32 = arith.constant 0 : i32
    %c0_i32_0 = arith.constant 0 : i32
    return %arg0, %c0_i32 : i32, i32
  }
  func.func @transform_2(%arg0: i32, %arg1: i32, %arg2: memref<1xi32, #tpu.memory_space<smem>>) -> (i32, i32) {
    %c0_i32 = arith.constant 0 : i32
    return %arg0, %arg1 : i32, i32
  }
}

</mosaic_0001>

<bundles_post_ra>
// kernel: tpu_custom_call.1
= control target key start
LH: loop header
LB: loop body
LE: loop exit
PB: predicated region body
PF: predicated region fallthrough
CT: control target
= control target key end

     0   :  { %s219_s12 = sld [smem:[#allocation0]]   ;;  %s260_s0 = inlined_call_operand.<no memory space> [shape: s32[1], index: 0, kind: input, shape index: {}]   ;;  %s261_s1 = inlined_call_operand.hbm [shape: f32[16,256], index: 1, kind: input, shape index: {}]   ;;  %s262_s2 = inlined_call_operand.hbm [shape: f32[16,128], index: 2, kind: input, shape index: {}]   ;;  %s263_s3 = inlined_call_operand.hbm [shape: f32[16,256], index: 3, kind: output, shape index: {}]  }
   0x1   :  { %9 = vsyncpa [#allocation5], 0 }
   0x2   :  { %10 = vsyncpa [#allocation8], 0 }
   0x3   :  { %11 = vsyncpa [#allocation6], 0  ;;  %s192_s16 = smov [#allocation4]   ;;  %s116_s22 = scalar_lea.hbm %s261_s1, 512 }
   0x4   :  { %s21_s17 = sshll.u32 %s192_s16, 4  ;;  %s22_s17 = int_to_ptr.vmem [resolvable:$true] %s21_s17 }
   0x6   :  { %s103_s13 = sshll.u32 %s219_s12, 9  ;;  %s104_s18 = sshll.u32 %s219_s12, 8 }
   0x7   :  { %s20_s15 = scalar_lea.hbm %s261_s1, %s103_s13 }
   0x8   :  { %s114_s19 = scalar_lea.hbm %s20_s15, 512  ;;  %p117_p1 = scmp.lt.u32.totalorder %s20_s15, %s261_s1 }
   0x9   :  { %p115_p0 = scmp.ne.s32.totalorder %s20_s15, %s114_s19  ;;  %p118_p2 = scmp.lt.u32.totalorder %s116_s22, %s114_s19 }
   0xa   :  { %p120_p4 = scmp.lt.u32.totalorder %s114_s19, %s20_s15 }
   0xb   :  { %p119_p3 = por %p118_p2, %p117_p1 }
   0xd   :  { %p121_p5 = por %p120_p4, %p119_p3 }
   0xf   :  { %p122_p6 = pnand %p121_p5, %p115_p0 }
  0x11   :  { %125 = shalt.err (!%p122_p6)
}
  0x12   :  { %s126_s25 = scalar_lea.vmem %s22_s17, 512  ;;  %p131_p8 = scmp.lt.s32.totalorder %s22_s17, %s22_s17 }
  0x13   :  { %p127_p7 = scmp.ne.s32.totalorder %s22_s17, %s126_s25  ;;  %p132_p9 = scmp.lt.s32.totalorder %s126_s25, %s126_s25 }
  0x15   :  { %p133_p10 = por %p132_p9, %p131_p8 }
  0x17   :  { %p134_p11 = pnand %p133_p10, %p127_p7 }
  0x19   :  { %137 = shalt.err (!%p134_p11)
}
  0x1a   :  { %s193_s26 = smov 256   ;;  %s194_s27 = smov 16  }
  0x1b   :  { %27 = dma.hbm_to_vmem [thread:$0]  %s20_s15, 512, %s22_s17, [#allocation5], %s193_s26, %s193_s26, %s194_s27  }
  0x1c   :  { %s35_s29 = scalar_lea.hbm %s262_s2, %s104_s18  ;;  %s195_s30 = smov [#allocation7]  }
  0x1d   :  { %s36_s4 = sshll.u32 %s195_s30, 4  ;;  %s138_s5 = scalar_lea.hbm %s35_s29, 256  ;;  %s37_s4 = int_to_ptr.vmem [resolvable:$true] %s36_s4 }
  0x1e   :  { %p139_p12 = scmp.ne.s32.totalorder %s35_s29, %s138_s5  ;;  %s140_s8 = scalar_lea.hbm %s262_s2, 256 }
  0x1f   :  { %p141_p13 = scmp.lt.u32.totalorder %s35_s29, %s262_s2  ;;  %p142_p0 = scmp.lt.u32.totalorder %s140_s8, %s138_s5 }
  0x20   :  { %p144_p2 = scmp.lt.u32.totalorder %s138_s5, %s35_s29 }
  0x21   :  { %p143_p1 = por %p142_p0, %p141_p13 }
  0x23   :  { %p145_p3 = por %p144_p2, %p143_p1 }
  0x25   :  { %p146_p4 = pnand %p145_p3, %p139_p12 }
  0x27   :  { %149 = shalt.err (!%p146_p4)
}
  0x28   :  { %s150_s11 = scalar_lea.vmem %s37_s4, 256  ;;  %p155_p6 = scmp.lt.s32.totalorder %s37_s4, %s37_s4 }
  0x29   :  { %p151_p5 = scmp.ne.s32.totalorder %s37_s4, %s150_s11  ;;  %p156_p7 = scmp.lt.s32.totalorder %s150_s11, %s150_s11 }
  0x2b   :  { %p157_p8 = por %p156_p7, %p155_p6 }
  0x2d   :  { %p158_p9 = pnand %p157_p8, %p151_p5 }
  0x2f   :  { %161 = shalt.err (!%p158_p9)
}
  0x30   :  { %s196_s0 = smov 128   ;;  %s197_s14 = smov 8  }
  0x31   :  { %42 = dma.hbm_to_vmem [thread:$0]  %s35_s29, 256, %s37_s4, [#allocation8], %s196_s0, %s196_s0, %s197_s14  }
  0x32   :  { %186 = dma.done.wait [#allocation5], 512  }
  0x33   :  { %187 = vsyncadd [#allocation5], 4294966784 }
  0x34   :  { %188 = dma.done.wait [#allocation8], 256  }
  0x35   :  { %189 = vsyncadd [#allocation8], 4294967040  ;;  %s198_s2 = smov [#allocation9]   ;;  %v52_v0 = vld [vmem:[#allocation7] sm:$0xff]  ;;  %v53_v2 = vld [vmem:[#allocation7 + $0x8] sm:$0xff]  ;;  %s74_s18 = scalar_lea.hbm %s263_s3, %s103_s13 }
  0x36   :  { %s75_s15 = sshll.u32 %s198_s2, 4  ;;  %v54_v1 = vld [vmem:[#allocation4] sm:$0xff]  ;;  %v55_v4 = vld [vmem:[#allocation4 + $0x10] sm:$0xff]  ;;  %v60_v5 = vld [vmem:[#allocation4 + $0x8] sm:$0xff]  ;;  %s76_s15 = int_to_ptr.vmem [resolvable:$true] %s75_s15 }
  0x37   :  { %v56_v3 = vadd.f32 %v54_v1, %v52_v0  ;;  %v61_v6 = vld [vmem:[#allocation4 + $0x18] sm:$0xff]  ;;  %v57_v7 = vadd.f32 %v55_v4, %v53_v2  ;;  %v62_v8 = vadd.f32 %v60_v5, %v52_v0  ;;  %s162_s19 = scalar_lea.vmem %s76_s15, 512  ;;  %p167_p11 = scmp.lt.s32.totalorder %s76_s15, %s76_s15 }
  0x38   :  { %v63_v9 = vadd.f32 %v61_v6, %v53_v2  ;;  %p163_p10 = scmp.ne.s32.totalorder %s76_s15, %s162_s19  ;;  %p168_p12 = scmp.lt.s32.totalorder %s162_s19, %s162_s19 }
  0x39   :  { %58 = vst [vmem:[#allocation9] sm:$0xff] %v56_v3  ;;  %59 = vst [vmem:[#allocation9 + $0x10] sm:$0xff] %v57_v7 }
  0x3a   :  { %64 = vst [vmem:[#allocation9 + $0x8] sm:$0xff] %v62_v8  ;;  %65 = vst [vmem:[#allocation9 + $0x18] sm:$0xff] %v63_v9  ;;  %p169_p13 = por %p168_p12, %p167_p11 }
  0x3c   :  { %p170_p0 = pnand %p169_p13, %p163_p10 }
  0x3e   :  { %173 = shalt.err (!%p170_p0)
}
  0x3f   :  { %s174_s20 = scalar_lea.hbm %s74_s18, 512  ;;  %s176_s22 = scalar_lea.hbm %s263_s3, 512 }
  0x40   :  { %p175_p1 = scmp.ne.s32.totalorder %s74_s18, %s174_s20  ;;  %p177_p2 = scmp.lt.u32.totalorder %s74_s18, %s263_s3 }
  0x41   :  { %p178_p3 = scmp.lt.u32.totalorder %s176_s22, %s174_s20  ;;  %p180_p5 = scmp.lt.u32.totalorder %s174_s20, %s74_s18 }
  0x43   :  { %p179_p4 = por %p178_p3, %p177_p2 }
  0x45   :  { %p181_p6 = por %p180_p5, %p179_p4 }
  0x47   :  { %p182_p7 = pnand %p181_p6, %p175_p1 }
  0x49   :  { %185 = shalt.err (!%p182_p7)
}
  0x4a   :  { %81 = dma.vmem_to_hbm [thread:$0]  %s76_s15, 512, %s74_s18, [#allocation6], %s193_s26, %s193_s26, %s194_s27  }
  0x4b   :  { %190 = dma.done.wait [#allocation6], 512  }
  0x4c   :  { %191 = vsyncadd [#allocation6], 4294966784 }
  0x4d   :  { %85 = vsyncpa [#allocation5], 1 }
  0x4e   :  { %86 = vsyncpa [#allocation8], 1 }
  0x4f   :  { %87 = vsyncpa [#allocation6], 1 }

</bundles_post_ra>
